<compile_context>
chip_gen: v7x
topology: tpu7x:2x2x1
jax: 0.10.0
libtpu: 0.0.40
codegen_flags: <defaults>
</compile_context>

<pallas_src>
import jax
import jax.numpy as jnp
from jax import lax
from jax.experimental import pallas as pl
from jax.experimental.pallas import tpu as pltpu

BN_EPS = 1e-5
PAD_NEG = -1e30  # bias for padded logit columns; exp() underflows to 0 exactly


def server_mlp_kernel(x_ref, w1_ref, gamma_ref, beta_ref, w2_ref, b2_ref, out_ref):
    x = x_ref[...]

    # fc1 (no bias: the linear bias is exactly cancelled by the BN mean
    # subtraction that follows).  Cast activations to the weight dtype so
    # bf16 weights give native bf16 MXU passes; accumulate in f32.
    h = jnp.dot(x.astype(w1_ref.dtype), w1_ref[...],
                preferred_element_type=jnp.float32)

    # BatchNorm1d in training mode (track_running_stats=False): batch mean and
    # biased batch variance over the batch dim.  Centered variance kept for
    # numerical robustness; the affine is fused into one (1,H) scale/shift.
    mean = jnp.mean(h, axis=0, keepdims=True)
    var = jnp.mean((h - mean) * (h - mean), axis=0, keepdims=True)
    scale = gamma_ref[...] * lax.rsqrt(var + BN_EPS)          # (1, H)
    shift = beta_ref[...] - mean * scale                       # (1, H)

    # normalize + affine + ReLU: only 2 wide VPU ops (mul, add) + max
    h = jnp.maximum(h * scale + shift, 0.0)

    # fc2: (B, H) @ (H, O_pad) + (1, O_pad)
    logits = jnp.dot(h.astype(w2_ref.dtype), w2_ref[...],
                     preferred_element_type=jnp.float32) + b2_ref[...]

    # log_softmax over the feature axis.  Padded columns carry a -1e30 bias so
    # they contribute exp(...) == 0 and never affect the real columns.
    m = jnp.max(logits, axis=1, keepdims=True)
    z = logits - m
    lse = jnp.log(jnp.sum(jnp.exp(z), axis=1, keepdims=True))
    out_ref[...] = (z - lse).astype(out_ref.dtype)


def server_mlp_forward(x, w1, b1, gamma, beta, w2, b2):
    """ServerMLP forward.

    x: (B, I); w1: (I, H); b1: (1, H) -- accepted for API parity with the
    PyTorch module but never used (cancelled by the BN mean subtraction);
    gamma/beta: (1, H); w2: (H, O); b2: (1, O).
    Weights may be bf16 for production sizes; elementwise math stays f32.
    """
    del b1  # exactly cancelled by BatchNorm's batch-mean subtraction

    B, I = x.shape
    H, O = w2.shape

    # Lane-dense output: pad the fc2 output features up to a multiple of 128
    # so the final store is an unmasked full-lane vst; the padded logits get a
    # huge negative bias so log_softmax ignores them, and they are sliced off
    # after the kernel.
    O_pad = ((O + 127) // 128) * 128
    if O_pad != O:
        w2 = jnp.pad(w2, ((0, 0), (0, O_pad - O)))
        b2 = jnp.pad(b2, ((0, 0), (0, O_pad - O)), constant_values=PAD_NEG)

    vmem = pl.BlockSpec(memory_space=pltpu.MemorySpace.VMEM)

    bytes_accessed = (x.nbytes + w1.nbytes + gamma.nbytes + beta.nbytes
                      + w2.nbytes + b2.nbytes + B * O_pad * 4)
    cost = pl.CostEstimate(
        flops=2 * B * (I * H + H * O_pad),
        transcendentals=B * O_pad + B + H,   # exp + log + rsqrt
        bytes_accessed=bytes_accessed,
    )

    out = pl.pallas_call(
        server_mlp_kernel,
        out_shape=jax.ShapeDtypeStruct((B, O_pad), jnp.float32),
        in_specs=[vmem] * 6,
        out_specs=vmem,
        cost_estimate=cost,
    )(x, w1, gamma, beta, w2, b2)

    return out[:, :O]


def reference_forward(x, w1, b1, gamma, beta, w2, b2):
    """Pure-JAX reference matching the PyTorch module (includes fc1 bias)."""
    h = x @ w1 + b1
    mean = jnp.mean(h, axis=0, keepdims=True)
    var = jnp.mean((h - mean) ** 2, axis=0, keepdims=True)
    h = (h - mean) / jnp.sqrt(var + BN_EPS)
    h = h * gamma + beta
    h = jnp.maximum(h, 0.0)
    logits = h @ w2 + b2
    return jax.nn.log_softmax(logits, axis=1)


if __name__ == "__main__":
    # Small shapes consistent with the module: batch=8, input=32, hidden=64, out=16
    B, I, H, O = 8, 32, 64, 16

    key = jax.random.PRNGKey(0)
    kx, k1, k2, k3, k4 = jax.random.split(key, 5)

    x = jax.random.normal(kx, (B, I), dtype=jnp.float32)

    # Deterministic param init mimicking nn.Linear default U(-1/sqrt(fan_in), 1/sqrt(fan_in)).
    lim1 = 1.0 / jnp.sqrt(jnp.float32(I))
    w1 = jax.random.uniform(k1, (I, H), minval=-lim1, maxval=lim1, dtype=jnp.float32)
    b1 = jax.random.uniform(k2, (1, H), minval=-lim1, maxval=lim1, dtype=jnp.float32)

    lim2 = 1.0 / jnp.sqrt(jnp.float32(H))
    w2 = jax.random.uniform(k3, (H, O), minval=-lim2, maxval=lim2, dtype=jnp.float32)
    b2 = jax.random.uniform(k4, (1, O), minval=-lim2, maxval=lim2, dtype=jnp.float32)

    # BatchNorm1d affine params: default gamma=1, beta=0.
    gamma = jnp.ones((1, H), dtype=jnp.float32)
    beta = jnp.zeros((1, H), dtype=jnp.float32)

    out = server_mlp_forward(x, w1, b1, gamma, beta, w2, b2)
    out = jax.block_until_ready(out)

    ref = reference_forward(x, w1, b1, gamma, beta, w2, b2)
    assert out.shape == (B, O)
    assert jnp.allclose(out, ref, atol=1e-4, rtol=1e-4), "mismatch vs JAX reference"

    print("KERNEL_OK")
</pallas_src>

<mosaic_0001>
module attributes {stable_mosaic.version = 11 : i64} {
  func.func @server_mlp_kernel(%arg0: memref<8x32xf32, #tpu.memory_space<vmem>>, %arg1: memref<32x64xf32, #tpu.memory_space<vmem>>, %arg2: memref<1x64xf32, #tpu.memory_space<vmem>>, %arg3: memref<1x64xf32, #tpu.memory_space<vmem>>, %arg4: memref<64x128xf32, #tpu.memory_space<vmem>>, %arg5: memref<1x128xf32, #tpu.memory_space<vmem>>, %arg6: memref<8x128xf32, #tpu.memory_space<vmem>>) attributes {dimension_semantics = [], scalar_prefetch = 0 : i64, scratch_operands = 0 : i64, tpu.core_type = #tpu.core_type<tc>} {
    %c0 = arith.constant 0 : index
    %c0_0 = arith.constant 0 : index
    %0 = vector.load %arg0[%c0, %c0_0] : memref<8x32xf32, #tpu.memory_space<vmem>>, vector<8x32xf32>
    %c0_1 = arith.constant 0 : index
    %c0_2 = arith.constant 0 : index
    %1 = vector.load %arg1[%c0_1, %c0_2] : memref<32x64xf32, #tpu.memory_space<vmem>>, vector<32x64xf32>
    %cst = arith.constant dense<0.000000e+00> : vector<8x64xf32>
    %2 = tpu.matmul %0, %1, %cst {dimension_numbers = #tpu.dot_dimension_numbers<[1], [0], [0], [1], [0, 0, 1, 1], [], []>} : vector<8x32xf32>, vector<32x64xf32>, vector<8x64xf32> -> vector<8x64xf32>
    %cst_3 = arith.constant dense<0.000000e+00> : vector<64xf32>
    %3 = vector.multi_reduction <add>, %2, %cst_3 [0] : vector<8x64xf32> to vector<64xf32>
    %4 = vector.shape_cast %3 : vector<64xf32> to vector<1x64xf32>
    %cst_4 = arith.constant 8.000000e+00 : f32
    %5 = vector.broadcast %cst_4 : f32 to vector<1x64xf32>
    %6 = arith.divf %4, %5 : vector<1x64xf32>
    %7 = vector.broadcast %6 : vector<1x64xf32> to vector<8x64xf32>
    %8 = arith.subf %2, %7 : vector<8x64xf32>
    %9 = vector.broadcast %6 : vector<1x64xf32> to vector<8x64xf32>
    %10 = arith.subf %2, %9 : vector<8x64xf32>
    %11 = arith.mulf %8, %10 : vector<8x64xf32>
    %cst_5 = arith.constant dense<0.000000e+00> : vector<64xf32>
    %12 = vector.multi_reduction <add>, %11, %cst_5 [0] : vector<8x64xf32> to vector<64xf32>
    %13 = vector.shape_cast %12 : vector<64xf32> to vector<1x64xf32>
    %cst_6 = arith.constant 8.000000e+00 : f32
    %14 = vector.broadcast %cst_6 : f32 to vector<1x64xf32>
    %15 = arith.divf %13, %14 : vector<1x64xf32>
    %c0_7 = arith.constant 0 : index
    %c0_8 = arith.constant 0 : index
    %16 = vector.load %arg2[%c0_7, %c0_8] : memref<1x64xf32, #tpu.memory_space<vmem>>, vector<1x64xf32>
    %cst_9 = arith.constant 9.99999974E-6 : f32
    %17 = vector.broadcast %cst_9 : f32 to vector<1x64xf32>
    %18 = arith.addf %15, %17 : vector<1x64xf32>
    %19 = math.rsqrt %18 : vector<1x64xf32>
    %20 = arith.mulf %16, %19 : vector<1x64xf32>
    %c0_10 = arith.constant 0 : index
    %c0_11 = arith.constant 0 : index
    %21 = vector.load %arg3[%c0_10, %c0_11] : memref<1x64xf32, #tpu.memory_space<vmem>>, vector<1x64xf32>
    %22 = arith.mulf %6, %20 : vector<1x64xf32>
    %23 = arith.subf %21, %22 : vector<1x64xf32>
    %24 = vector.broadcast %20 : vector<1x64xf32> to vector<8x64xf32>
    %25 = arith.mulf %2, %24 : vector<8x64xf32>
    %26 = vector.broadcast %23 : vector<1x64xf32> to vector<8x64xf32>
    %27 = arith.addf %25, %26 : vector<8x64xf32>
    %cst_12 = arith.constant 0.000000e+00 : f32
    %28 = vector.broadcast %cst_12 : f32 to vector<8x64xf32>
    %29 = arith.maximumf %27, %28 : vector<8x64xf32>
    %c0_13 = arith.constant 0 : index
    %c0_14 = arith.constant 0 : index
    %30 = vector.load %arg4[%c0_13, %c0_14] : memref<64x128xf32, #tpu.memory_space<vmem>>, vector<64x128xf32>
    %cst_15 = arith.constant dense<0.000000e+00> : vector<8x128xf32>
    %31 = tpu.matmul %29, %30, %cst_15 {dimension_numbers = #tpu.dot_dimension_numbers<[1], [0], [0], [1], [0, 0, 1, 1], [], []>} : vector<8x64xf32>, vector<64x128xf32>, vector<8x128xf32> -> vector<8x128xf32>
    %c0_16 = arith.constant 0 : index
    %c0_17 = arith.constant 0 : index
    %32 = vector.load %arg5[%c0_16, %c0_17] : memref<1x128xf32, #tpu.memory_space<vmem>>, vector<1x128xf32>
    %33 = vector.broadcast %32 : vector<1x128xf32> to vector<8x128xf32>
    %34 = arith.addf %31, %33 : vector<8x128xf32>
    %cst_18 = arith.constant dense<0xFF800000> : vector<8xf32>
    %35 = vector.multi_reduction <maximumf>, %34, %cst_18 [1] : vector<8x128xf32> to vector<8xf32>
    %36 = vector.shape_cast %35 : vector<8xf32> to vector<8x1xf32>
    %37 = vector.broadcast %36 : vector<8x1xf32> to vector<8x128xf32>
    %38 = arith.subf %34, %37 : vector<8x128xf32>
    %39 = math.exp %38 : vector<8x128xf32>
    %cst_19 = arith.constant dense<0.000000e+00> : vector<8xf32>
    %40 = vector.multi_reduction <add>, %39, %cst_19 [1] : vector<8x128xf32> to vector<8xf32>
    %41 = vector.shape_cast %40 : vector<8xf32> to vector<8x1xf32>
    %42 = math.log %41 : vector<8x1xf32>
    %43 = vector.broadcast %42 : vector<8x1xf32> to vector<8x128xf32>
    %44 = arith.subf %38, %43 : vector<8x128xf32>
    %c0_20 = arith.constant 0 : index
    %c0_21 = arith.constant 0 : index
    %45 = vector.load %arg6[%c0_20, %c0_21] : memref<8x128xf32, #tpu.memory_space<vmem>>, vector<8x128xf32>
    tpu.vector_store %arg6[%c0_20, %c0_21], %44 {strides = array<i32>} : memref<8x128xf32, #tpu.memory_space<vmem>>, vector<8x128xf32>,
    return
  }
}

</mosaic_0001>

<bundles_post_ra>
// kernel: tpu_custom_call.1
= control target key start
LH: loop header
LB: loop body
LE: loop exit
PB: predicated region body
PF: predicated region fallthrough
CT: control target
= control target key end

     0   :  { %11 = vsyncpa [#allocation3], 0  ;;  %s583_s0 = inlined_call_operand.hbm [shape: f32[8,32], index: 0, kind: input, shape index: {}]   ;;  %s584_s1 = inlined_call_operand.hbm [shape: f32[32,64], index: 1, kind: input, shape index: {}]   ;;  %s585_s2 = inlined_call_operand.vmem [shape: f32[1,64], index: 2, kind: input, shape index: {}]   ;;  %s586_s3 = inlined_call_operand.vmem [shape: f32[1,64], index: 3, kind: input, shape index: {}]   ;;  %s587_s4 = inlined_call_operand.hbm [shape: f32[64,128], index: 4, kind: input, shape index: {}]   ;;  %s588_s5 = inlined_call_operand.vmem [shape: f32[1,128], index: 5, kind: input, shape index: {}]   ;;  %s589_s6 = inlined_call_operand.hbm [shape: f32[8,128], index: 6, kind: output, shape index: {}]  }
   0x1   :  { %12 = vsyncpa [#allocation6], 0 }
   0x2   :  { %13 = vsyncpa [#allocation4], 0  ;;  %s473_s21 = smov [#allocation5]   ;;  %s379_s25 = scalar_lea.hbm %s584_s1, 512 }
   0x3   :  { %s29_s22 = sshll.u32 %s473_s21, 4  ;;  %p380_p0 = scmp.ne.s32.totalorder %s584_s1, %s379_s25  ;;  %s30_s22 = int_to_ptr.vmem [resolvable:$true] %s29_s22 }
   0x4   :  { %p383_p1 = scmp.lt.u32.totalorder %s379_s25, %s584_s1 }
   0x6   :  { %p385_p2 = pnand %p383_p1, %p380_p0 }
   0x8   :  { %388 = shalt.err (!%p385_p2)
}
   0x9   :  { %s389_s30 = scalar_lea.vmem %s30_s22, 512  ;;  %p394_p4 = scmp.lt.s32.totalorder %s30_s22, %s30_s22 }
   0xa   :  { %p390_p3 = scmp.ne.s32.totalorder %s30_s22, %s389_s30  ;;  %p395_p5 = scmp.lt.s32.totalorder %s389_s30, %s389_s30 }
   0xc   :  { %p396_p6 = por %p395_p5, %p394_p4 }
   0xe   :  { %p397_p7 = pnand %p396_p6, %p390_p3 }
  0x10   :  { %400 = shalt.err (!%p397_p7)
}
  0x11   :  { %s474_s7 = smov 128   ;;  %s475_s8 = smov 8  }
  0x12   :  { %35 = dma.hbm_to_vmem [thread:$0]  %s584_s1, 512, %s30_s22, [#allocation6], %s474_s7, %s474_s7, %s475_s8  }
  0x13   :  { %s476_s11 = smov [#allocation2]   ;;  %s477_s13 = smov [#allocation7]  }
  0x14   :  { %s20_s12 = sshll.u32 %s476_s11, 4  ;;  %s45_s14 = sshll.u32 %s477_s13, 4  ;;  %s21_s12 = int_to_ptr.vmem [resolvable:$true] %s20_s12  ;;  %s46_s14 = int_to_ptr.vmem [resolvable:$true] %s45_s14 }
  0x15   :  { %s401_s17 = scalar_lea.hbm %s583_s0, 128 }
  0x16   :  { %p402_p8 = scmp.ne.s32.totalorder %s583_s0, %s401_s17  ;;  %p405_p9 = scmp.lt.u32.totalorder %s401_s17, %s583_s0 }
  0x18   :  { %p407_p10 = pnand %p405_p9, %p402_p8 }
  0x1a   :  { %410 = shalt.err (!%p407_p10)
}
  0x1b   :  { %s411_s1 = scalar_lea.vmem %s21_s12, 128  ;;  %p416_p12 = scmp.lt.s32.totalorder %s21_s12, %s21_s12 }
  0x1c   :  { %p412_p11 = scmp.ne.s32.totalorder %s21_s12, %s411_s1  ;;  %p417_p13 = scmp.lt.s32.totalorder %s411_s1, %s411_s1 }
  0x1e   :  { %p418_p0 = por %p417_p13, %p416_p12 }
  0x20   :  { %p419_p1 = pnand %p418_p0, %p412_p11 }
  0x22   :  { %422 = shalt.err (!%p419_p1)
}
  0x23   :  { %23 = dma.hbm_to_vmem [thread:$0]  %s583_s0, 128, %s21_s12, [#allocation3]  }
  0x24   :  { %s423_s26 = scalar_lea.hbm %s587_s4, 1024 }
  0x25   :  { %p424_p2 = scmp.ne.s32.totalorder %s587_s4, %s423_s26  ;;  %p427_p3 = scmp.lt.u32.totalorder %s423_s26, %s587_s4 }
  0x27   :  { %p429_p4 = pnand %p427_p3, %p424_p2 }
  0x29   :  { %432 = shalt.err (!%p429_p4)
}
  0x2a   :  { %s433_s9 = scalar_lea.vmem %s46_s14, 1024  ;;  %p438_p6 = scmp.lt.s32.totalorder %s46_s14, %s46_s14 }
  0x2b   :  { %p434_p5 = scmp.ne.s32.totalorder %s46_s14, %s433_s9  ;;  %p439_p7 = scmp.lt.s32.totalorder %s433_s9, %s433_s9 }
  0x2d   :  { %p440_p8 = por %p439_p7, %p438_p6 }
  0x2f   :  { %p441_p9 = pnand %p440_p8, %p434_p5 }
  0x31   :  { %444 = shalt.err (!%p441_p9)
}
  0x32   :  { %51 = dma.hbm_to_vmem [thread:$0]  %s587_s4, 1024, %s46_s14, [#allocation6], %s474_s7, %s474_s7, %s475_s8  }
  0x33   :  { %467 = dma.done.wait [#allocation3], 128  }
  0x34   :  { %468 = vsyncadd [#allocation3], 4294967168 }
  0x35   :  { %469 = dma.done.wait [#allocation6], 1536  }
  0x36   :  { %470 = vsyncadd [#allocation6], 4294965760  ;;  %v478_v0 = vmov 0.0|0.0   ;;  %vm479_vm0 = vmmov 0   ;;  %v480_v1 = vmov 0.0   ;;  %v64_v2 = vld [vmem:[#allocation5] sm:$0xff]  ;;  %v170_v42 = vlaneseq }
  0x37   :  { %346 = vmatprep.subr.bf16.mxu0 %v478_v0  ;;  %324 = vmatprep.mubr.msk.f32.mxu0 %vm479_vm0, %v480_v1  ;;  %v65_v3 = vld [vmem:[#allocation5 + $0x8] sm:$0xff]  ;;  %v66_v4 = vld [vmem:[#allocation5 + $0x10] sm:$0xff]  ;;  %v67_v6 = vld [vmem:[#allocation5 + $0x18] sm:$0xff]  ;;  %vm68_vm1 = vcmask 261120   ;;  %vm142_vm2 = vcmask 523264  }
  0x38   :  { %352 = vmatprep.subr.bf16.mxu1 %v478_v0  ;;  %343 = vmatprep.mubr.msk.f32.mxu1 %vm479_vm0, %v480_v1  ;;  %v347_v5 = vpack.c.bf16 %v65_v3, %v64_v2  ;;  %v350_v7 = vpack.c.bf16 %v67_v6, %v66_v4  ;;  %v63_v8 = vld [vmem:[#allocation2] sm:$0xff]  ;;  %v184_v9 = vld [vmem:[#allocation7] sm:$0xff]  ;;  %v185_v10 = vld [vmem:[#allocation7 + $0x8] sm:$0xff]  ;;  %v171_v43 = vshrl.u32 %v170_v42, 7 }
  0x39   :  { %v353_v11 = vpack.c.bf16 %v185_v10, %v184_v9  ;;  %v186_v12 = vld [vmem:[#allocation7 + $0x10] sm:$0xff]  ;;  %v187_v13 = vld [vmem:[#allocation7 + $0x18] sm:$0xff]  ;;  %v188_v15 = vld [vmem:[#allocation7 + $0x20] sm:$0xff] }
  0x3a   :  { %348 = vmatpush3.bf16.msra.mxu0 %v347_v5  ;;  %v356_v14 = vpack.c.bf16 %v187_v13, %v186_v12  ;;  %v189_v16 = vld [vmem:[#allocation7 + $0x28] sm:$0xff]  ;;  %v190_v18 = vld [vmem:[#allocation7 + $0x30] sm:$0xff]  ;;  %v191_v19 = vld [vmem:[#allocation7 + $0x38] sm:$0xff]  ;;  %v172_v45 = vsub.s32 0, %v171_v43 }
  0x3b   :  { %349 = vmatprep.subr.bf16.mxu0 %v478_v0  ;;  %354 = vmatpush3.bf16.msra.mxu1 %v353_v11  ;;  %v359_v17 = vpack.c.bf16 %v189_v16, %v188_v15  ;;  %v362_v20 = vpack.c.bf16 %v191_v19, %v190_v18  ;;  %v162_v44 = vld [vmem:[%s585_s2] sm:$0x1]  ;;  %s481_s2 = smov [#allocation8]  }
  0x3c   :  { %355 = vmatprep.subr.bf16.mxu1 %v478_v0  ;;  %v166_v48 = vld [vmem:[%s586_s3] sm:$0x1]  ;;  %s289_s3 = sshll.u32 %s481_s2, 4  ;;  %s290_s3 = int_to_ptr.vmem [resolvable:$true] %s289_s3 }
  0x3d   :  { %v300_v56 = vld [vmem:[%s588_s5] ss:$0 sm:$0xff]  ;;  %s445_s5 = scalar_lea.vmem %s290_s3, 128  ;;  %p450_p11 = scmp.lt.s32.totalorder %s290_s3, %s290_s3 }
  0x3e   :  { %351 = vmatpush3.bf16.msra.mxu0 %v350_v7  ;;  %p446_p10 = scmp.ne.s32.totalorder %s290_s3, %s445_s5  ;;  %p451_p12 = scmp.lt.s32.totalorder %s445_s5, %s445_s5 }
  0x3f   :  { %357 = vmatpush3.bf16.msra.mxu1 %v356_v14 }
  0x40   :  { %358 = vmatprep.subr.bf16.mxu1 %v478_v0  ;;  %p452_p13 = por %p451_p12, %p450_p11 }
  0x41   :  { %325 = vmatmul.mubr.msk.f32.vlgmr.msra.gmra.mrb[0].mxu0 %vm68_vm1, %v63_v8 }
  0x42   :  { %p453_p0 = pnand %p452_p13, %p446_p10 }
  0x43   :  { %360 = vmatpush3.bf16.msra.mxu1 %v359_v17 }
  0x44   :  { %361 = vmatprep.subr.bf16.mxu1 %v478_v0 }
  0x47   :  { %363 = vmatpush3.bf16.msra.mxu1 %v362_v20 }
 0x114   :  { %v138_v21 = vpop.f32.mrb[0].mxu0 }
 0x115   :  { %v143_v22 = vsel %vm142_vm2, %v138_v21, 0.0  ;;  %v326_v23 = vpop.f32.mrb[1].mxu0 }
 0x116   :  { %v144_v24 = vrot.slane %v143_v22, 4 }
 0x118   :  { %v145_v25 = vadd.f32 %v144_v24, %v143_v22 }
 0x11a   :  { %v146_v26 = vrot.slane %v145_v25, 2 }
 0x11c   :  { %v147_v27 = vadd.f32 %v146_v26, %v145_v25 }
 0x11e   :  { %v148_v28 = vrot.slane %v147_v27, 1 }
 0x120   :  { %v149_v29 = vadd.f32 %v148_v28, %v147_v27 }
 0x122   :  { %v151_v30 = vmul.f32 0.125, %v149_v29 }
 0x124   :  { %v152_v31 = vsub.f32 %v138_v21, %v151_v30 }
 0x126   :  { %v153_v32 = vmul.f32 %v152_v31, %v152_v31 }
 0x128   :  { %v154_v33 = vsel %vm142_vm2, %v153_v32, 0.0 }
 0x129   :  { %v155_v34 = vrot.slane %v154_v33, 4 }
 0x12b   :  { %v156_v35 = vadd.f32 %v155_v34, %v154_v33 }
 0x12d   :  { %v157_v36 = vrot.slane %v156_v35, 2 }
 0x12f   :  { %v158_v37 = vadd.f32 %v157_v36, %v156_v35 }
 0x131   :  { %v159_v38 = vrot.slane %v158_v37, 1 }
 0x133   :  { %v160_v39 = vadd.f32 %v159_v38, %v158_v37 }
 0x135   :  { %v161_v40 = vmul.f32 0.125, %v160_v39 }
 0x137   :  { %v163_v41 = vadd.f32 1e-05, %v161_v40 }
 0x139   :  { %373 = vrsqrt.f32 %v163_v41 }
 0x143   :  { %v374_v46 = vpop.eup %373 }
 0x144   :  { %v165_v47 = vmul.f32 %v374_v46, %v162_v44 }
 0x146   :  { %v167_v49 = vmul.f32 %v165_v47, %v151_v30  ;;  %v173_v50 = vrot.slane %v165_v47, %v172_v45 }
 0x148   :  { %v168_v51 = vsub.f32 %v166_v48, %v167_v49  ;;  %v175_v52 = vmul.f32 %v173_v50, %v138_v21 }
 0x14a   :  { %v180_v53 = vrot.slane %v168_v51, %v172_v45 }
 0x14c   :  { %v182_v54 = vadd.f32 %v180_v53, %v175_v52 }
 0x14e   :  { %v183_v55 = vmax.f32 %v182_v54, 0.0 }
 0x150   :  { %344 = vmatmul.mubr.msk.f32.vlgmr.msra.gmra.mrb[0].mxu1 %vm142_vm2, %v183_v55 }
 0x223   :  { %v268_v57 = vpop.f32.mrb[0].mxu1 }
 0x224   :  { %v269_v58 = vadd.f32 %v300_v56, %v268_v57  ;;  %v345_v59 = vpop.f32.mrb[1].mxu1 }
 0x226   :  { %272 = vmax.xlane.f32.xlu0 %v269_v58 }
 0x2b3   :  { %v273_v60 = vpop.xlane.xlu0 %272 }
 0x2b4   :  { %v274_v61 = vsub.f32 %v269_v58, %v273_v60 }
 0x2b6   :  { %v275_v62 = vmul.f32 1.442695, %v274_v61 }
 0x2b8   :  { %375 = vpow2.f32 %v275_v62 }
 0x2c2   :  { %v376_v63 = vpop.eup %375 }
 0x2c3   :  { %277 = vadd.xlane.f32.xlu0 %v376_v63 }
 0x350   :  { %v278_v0 = vpop.xlane.xlu0 %277 }
 0x351   :  { %377 = vlog2.f32 %v278_v0 }
 0x35b   :  { %v378_v1 = vpop.eup %377 }
 0x35c   :  { %v280_v2 = vmul.f32 0.6931472, %v378_v1 }
 0x35e   :  { %v281_v3 = vsub.f32 %v274_v61, %v280_v2 }
 0x360   :  { %282 = vst [vmem:[#allocation8] sm:$0xff] %v281_v3 }
 0x361   :  { %456 = shalt.err (!%p453_p0)
}
 0x362   :  { %s457_s16 = scalar_lea.hbm %s589_s6, 128 }
 0x363   :  { %p458_p1 = scmp.ne.s32.totalorder %s589_s6, %s457_s16  ;;  %p461_p2 = scmp.lt.u32.totalorder %s457_s16, %s589_s6 }
 0x365   :  { %p463_p3 = pnand %p461_p2, %p458_p1 }
 0x367   :  { %466 = shalt.err (!%p463_p3)
}
 0x368   :  { %292 = dma.vmem_to_hbm [thread:$0]  %s290_s3, 128, %s589_s6, [#allocation4]  }
 0x369   :  { %471 = dma.done.wait [#allocation4], 128  }
 0x36a   :  { %472 = vsyncadd [#allocation4], 4294967168 }
 0x36b   :  { %296 = vsyncpa [#allocation3], 1 }
 0x36c   :  { %297 = vsyncpa [#allocation6], 1 }
 0x36d   :  { %298 = vsyncpa [#allocation4], 1 }

</bundles_post_ra>
